<compile_context>
chip_gen: v7x
topology: tpu7x:2x2x1
jax: 0.10.0
libtpu: 0.0.40
codegen_flags: <defaults>
</compile_context>

<pallas_src>
import math

import jax
import jax.numpy as jnp
from jax.experimental import pallas as pl
from jax.experimental.pallas import tpu as pltpu

# Explicit scoped-VMEM budget: above v5e's 16 MiB default, safely under the
# ~48 MiB practical ceiling on v7x (64 MiB physical per TensorCore).
_VMEM_LIMIT_BYTES = 32 * 1024 * 1024


def _round_up(v, m):
    return ((v + m - 1) // m) * m


def _pad_gate_cols(w, h, hp):
    """(rows, 4h) -> (rows, 4hp): zero-pad each of the 4 PyTorch gate blocks
    (i, f, g, o) to hp columns so gate slices are 128-lane aligned."""
    if hp == h:
        return w
    parts = []
    for k in range(4):
        parts.append(jnp.pad(w[:, k * h:(k + 1) * h], ((0, 0), (0, hp - h))))
    return jnp.concatenate(parts, axis=1)


# ---------------------------------------------------------------------------
# Kernel 1: input projection for all timesteps at once
#   xproj = x2d @ W_ih^T + (b_ih + b_hh)     x2d: (Lp*B, D), W_ih^T: (D, 4Hp)
# ---------------------------------------------------------------------------
def _input_proj_kernel(x_ref, w_ref, b_ref, o_ref):
    # x_ref: (tm, D) bf16   w_ref: (D, 4Hp) bf16   b_ref: (1, 4Hp) f32
    o_ref[...] = (
        jnp.dot(x_ref[...], w_ref[...], preferred_element_type=jnp.float32)
        + b_ref[...]
    ).astype(o_ref.dtype)


def _input_projection(x2d, w_ih_t, bias_row):
    M, D = x2d.shape
    G = w_ih_t.shape[1]  # 4 * Hp
    # Large row tile (full M when small; else 1024 rows, multiple of 128).
    tm = M if M <= 1024 else 1024
    grid = (pl.cdiv(M, tm),)
    return pl.pallas_call(
        _input_proj_kernel,
        out_shape=jax.ShapeDtypeStruct((M, G), jnp.bfloat16),
        grid_spec=pltpu.PrefetchScalarGridSpec(
            num_scalar_prefetch=0,
            grid=grid,
            in_specs=[
                pl.BlockSpec((tm, D), lambda m: (m, 0)),
                pl.BlockSpec((D, G), lambda m: (0, 0)),   # weight resident
                pl.BlockSpec((1, G), lambda m: (0, 0)),   # bias resident
            ],
            out_specs=pl.BlockSpec((tm, G), lambda m: (m, 0)),
        ),
        compiler_params=pltpu.CompilerParams(
            dimension_semantics=("parallel",),
            vmem_limit_bytes=_VMEM_LIMIT_BYTES,
        ),
    )(x2d, w_ih_t, bias_row)


# ---------------------------------------------------------------------------
# Kernel 2: time-chunked LSTM recurrence fused with (eval) Dropout -> ReLU -> fc
# ---------------------------------------------------------------------------
def _lstm_recurrence_kernel(xp_ref, whh_ref, wfc_ref, bfc_ref, out_ref,
                            h_ref, c_ref):
    # xp_ref : (Tc, TB, 4Hp) bf16  precomputed x_t @ W_ih^T + b (gate-aligned)
    # whh_ref: (Hp, 4Hp) bf16 resident      wfc_ref: (Hp, Np) bf16 resident
    # bfc_ref: (1, Np) f32 resident         out_ref: (Tc, TB, Np)
    # h_ref, c_ref: (TB, Hp) f32 scratch carried across the time-chunk axis
    t_chunk = pl.program_id(1)

    @pl.when(t_chunk == 0)
    def _():
        h_ref[...] = jnp.zeros_like(h_ref)
        c_ref[...] = jnp.zeros_like(c_ref)

    n_steps = xp_ref.shape[0]
    hp = whh_ref.shape[0]

    def step(t, carry):
        h, c = carry
        gates = xp_ref[t].astype(jnp.float32) + jnp.dot(
            h.astype(whh_ref.dtype), whh_ref[...],
            preferred_element_type=jnp.float32)
        # PyTorch gate order: input, forget, cell(g), output.  Each slice is a
        # whole 128-lane-aligned block (Hp is a multiple of 128).
        i_g = jax.nn.sigmoid(gates[:, 0 * hp:1 * hp])
        f_g = jax.nn.sigmoid(gates[:, 1 * hp:2 * hp])
        g_g = jnp.tanh(gates[:, 2 * hp:3 * hp])
        o_g = jax.nn.sigmoid(gates[:, 3 * hp:4 * hp])
        c = f_g * c + i_g * g_g
        h = o_g * jnp.tanh(c)
        # TODO(synk): nn.Dropout(p=0.5) is identity at inference; training-mode
        # stochastic dropout is not implemented here.
        y = jnp.maximum(h, 0.0)  # ReLU
        out_ref[t] = (
            jnp.dot(y.astype(wfc_ref.dtype), wfc_ref[...],
                    preferred_element_type=jnp.float32)
            + bfc_ref[...]
        ).astype(out_ref.dtype)
        return h, c

    h, c = jax.lax.fori_loop(0, n_steps, step, (h_ref[...], c_ref[...]),
                             unroll=True)
    h_ref[...] = h
    c_ref[...] = c


def simple_lstm_forward(x, params):
    """Pallas forward of SimpleLSTM: LSTM -> Dropout(eval) -> ReLU -> Linear.

    x: (B, L, input_size).  params use PyTorch layouts:
      w_ih (4H, D), w_hh (4H, H), b_ih (4H,), b_hh (4H,), w_fc (n_out, H),
      b_fc (n_out,).  Returns (B, L, n_out).
    """
    B, L, D = x.shape
    H = params["w_hh"].shape[1]
    n_out = params["w_fc"].shape[0]

    Hp = _round_up(H, 128)       # gate-aligned hidden width
    G = 4 * Hp
    Np = _round_up(n_out, 128)   # lane-dense fc output width

    # Time chunk: amortize the ~0.35 µs per-grid-step overhead over Tc steps.
    Tc = L if L <= 16 else 16
    Lp = _round_up(L, Tc)

    # Batch tile: full batch up to 256 rows (multiple of 8 when tiled).
    TB = B if B <= 256 else 256
    nb = pl.cdiv(B, TB)

    f32, bf16 = jnp.float32, jnp.bfloat16

    # ---- parameter repacking: gate-aligned, lane-padded, bf16 MXU operands ----
    w_ih_t = _pad_gate_cols(params["w_ih"].astype(f32).T, H, Hp).astype(bf16)   # (D, G)
    w_hh_t = _pad_gate_cols(params["w_hh"].astype(f32).T, H, Hp)                # (H, G)
    w_hh_t = jnp.pad(w_hh_t, ((0, Hp - H), (0, 0))).astype(bf16)                # (Hp, G)
    bias_row = _pad_gate_cols(
        (params["b_ih"] + params["b_hh"]).astype(f32).reshape(1, 4 * H), H, Hp)  # (1, G) f32
    w_fc_t = jnp.pad(params["w_fc"].astype(f32).T,
                     ((0, Hp - H), (0, Np - n_out))).astype(bf16)                # (Hp, Np)
    b_fc_row = jnp.pad(params["b_fc"].astype(f32).reshape(1, n_out),
                       ((0, 0), (0, Np - n_out)))                                # (1, Np) f32

    # ---- time-major x, padded along time to a multiple of Tc (zeros) ----
    x_tm = jnp.transpose(x, (1, 0, 2)).astype(bf16)                              # (L, B, D)
    if Lp > L:
        x_tm = jnp.pad(x_tm, ((0, Lp - L), (0, 0), (0, 0)))

    # Kernel 1: one big MXU matmul for every timestep's input projection.
    xproj = _input_projection(x_tm.reshape(Lp * B, D), w_ih_t, bias_row)
    xproj = xproj.reshape(Lp, B, G)                                              # (Lp, B, G)

    # Kernel 2: chunked recurrence; W_hh^T / W_fc^T / b_fc stay VMEM-resident,
    # h/c carried in f32 scratch across the sequential time-chunk axis.
    out_p = pl.pallas_call(
        _lstm_recurrence_kernel,
        out_shape=jax.ShapeDtypeStruct((Lp, B, Np), f32),
        grid_spec=pltpu.PrefetchScalarGridSpec(
            num_scalar_prefetch=0,
            grid=(nb, Lp // Tc),   # (batch tiles: parallel, time: sequential)
            in_specs=[
                pl.BlockSpec((Tc, TB, G), lambda b, t: (t, b, 0)),
                pl.BlockSpec((Hp, G), lambda b, t: (0, 0)),      # W_hh^T resident
                pl.BlockSpec((Hp, Np), lambda b, t: (0, 0)),     # W_fc^T resident
                pl.BlockSpec((1, Np), lambda b, t: (0, 0)),      # b_fc resident
            ],
            out_specs=pl.BlockSpec((Tc, TB, Np), lambda b, t: (t, b, 0)),
            scratch_shapes=[
                pltpu.VMEM((TB, Hp), f32),   # h
                pltpu.VMEM((TB, Hp), f32),   # c
            ],
        ),
        compiler_params=pltpu.CompilerParams(
            dimension_semantics=("parallel", "arbitrary"),
            vmem_limit_bytes=_VMEM_LIMIT_BYTES,
        ),
    )(xproj, w_hh_t, w_fc_t, b_fc_row)

    out = out_p[:L, :, :n_out]                       # drop time / lane padding
    return jnp.transpose(out, (1, 0, 2)).astype(x.dtype)       # (B, L, n_out)


# ---------------------------------------------------------------------------
# Pure-JAX f32 reference (high-precision matmuls) for correctness checking.
# ---------------------------------------------------------------------------
def ref_forward(x, params):
    B, L, D = x.shape
    H = params["w_hh"].shape[1]
    hp = jax.lax.Precision.HIGHEST
    w_ih_t = params["w_ih"].T
    w_hh_t = params["w_hh"].T
    bias = params["b_ih"] + params["b_hh"]
    h = jnp.zeros((B, H), jnp.float32)
    c = jnp.zeros((B, H), jnp.float32)
    hs = []
    for t in range(L):
        gates = (jnp.dot(x[:, t], w_ih_t, precision=hp)
                 + jnp.dot(h, w_hh_t, precision=hp) + bias)
        i_g = jax.nn.sigmoid(gates[:, 0 * H:1 * H])
        f_g = jax.nn.sigmoid(gates[:, 1 * H:2 * H])
        g_g = jnp.tanh(gates[:, 2 * H:3 * H])
        o_g = jax.nn.sigmoid(gates[:, 3 * H:4 * H])
        c = f_g * c + i_g * g_g
        h = o_g * jnp.tanh(c)
        hs.append(h)
    out = jnp.stack(hs, axis=1)           # (B, L, H)
    out = jnp.maximum(out, 0.0)           # dropout (eval) -> relu
    return jnp.dot(out, params["w_fc"].T, precision=hp) + params["b_fc"]


if __name__ == "__main__":
    B, L = 2, 8
    INPUT_SIZE, HIDDEN_SIZE, OUTPUT_SIZE = 32, 32, 32

    key = jax.random.PRNGKey(0)
    keys = jax.random.split(key, 7)
    bound = 1.0 / math.sqrt(HIDDEN_SIZE)

    x = jax.random.normal(keys[0], (B, L, INPUT_SIZE), dtype=jnp.float32)
    params = {
        "w_ih": jax.random.uniform(keys[1], (4 * HIDDEN_SIZE, INPUT_SIZE),
                                   minval=-bound, maxval=bound, dtype=jnp.float32),
        "w_hh": jax.random.uniform(keys[2], (4 * HIDDEN_SIZE, HIDDEN_SIZE),
                                   minval=-bound, maxval=bound, dtype=jnp.float32),
        "b_ih": jax.random.uniform(keys[3], (4 * HIDDEN_SIZE,),
                                   minval=-bound, maxval=bound, dtype=jnp.float32),
        "b_hh": jax.random.uniform(keys[4], (4 * HIDDEN_SIZE,),
                                   minval=-bound, maxval=bound, dtype=jnp.float32),
        "w_fc": jax.random.uniform(keys[5], (OUTPUT_SIZE, HIDDEN_SIZE),
                                   minval=-bound, maxval=bound, dtype=jnp.float32),
        "b_fc": jax.random.uniform(keys[6], (OUTPUT_SIZE,),
                                   minval=-bound, maxval=bound, dtype=jnp.float32),
    }

    out = simple_lstm_forward(x, params)
    out = jax.block_until_ready(out)

    ref = ref_forward(x, params)
    assert out.shape == (B, L, OUTPUT_SIZE)
    # bf16 MXU operands (f32 accumulation, f32 h/c state) -> relaxed tolerance.
    assert jnp.allclose(out, ref, atol=4e-2, rtol=4e-2), \
        "mismatch vs pure-JAX LSTM reference"

    print("KERNEL_OK")
</pallas_src>

<mosaic_0001>
module attributes {stable_mosaic.version = 11 : i64} {
  func.func @_input_proj_kernel(%arg0: i32, %arg1: memref<16x32xbf16, #tpu.memory_space<vmem>>, %arg2: memref<32x512xbf16, #tpu.memory_space<vmem>>, %arg3: memref<1x512xf32, #tpu.memory_space<vmem>>, %arg4: memref<16x512xbf16, #tpu.memory_space<vmem>>) attributes {dimension_semantics = [#tpu.dimension_semantics<parallel>], iteration_bounds = array<i64: 1>, scalar_prefetch = 0 : i64, scratch_operands = 0 : i64, tpu.core_type = #tpu.core_type<tc>, window_params = [{transform_indices = @transform_0, window_bounds = array<i64: 16, 32>}, {pipeline_mode = #tpu.pipeline_mode<synchronous>, transform_indices = @transform_1, window_bounds = array<i64: 32, 512>}, {pipeline_mode = #tpu.pipeline_mode<synchronous>, transform_indices = @transform_2, window_bounds = array<i64: 1, 512>}, {transform_indices = @transform_3, window_bounds = array<i64: 16, 512>}]} {
    %c0 = arith.constant 0 : index
    %c0_0 = arith.constant 0 : index
    %0 = vector.load %arg1[%c0, %c0_0] : memref<16x32xbf16, #tpu.memory_space<vmem>>, vector<16x32xbf16>
    %c0_1 = arith.constant 0 : index
    %c0_2 = arith.constant 0 : index
    %1 = vector.load %arg2[%c0_1, %c0_2] : memref<32x512xbf16, #tpu.memory_space<vmem>>, vector<32x512xbf16>
    %cst = arith.constant dense<0.000000e+00> : vector<16x512xf32>
    %2 = tpu.matmul %0, %1, %cst {dimension_numbers = #tpu.dot_dimension_numbers<[1], [0], [0], [1], [0, 0, 1, 1], [], []>} : vector<16x32xbf16>, vector<32x512xbf16>, vector<16x512xf32> -> vector<16x512xf32>
    %c0_3 = arith.constant 0 : index
    %c0_4 = arith.constant 0 : index
    %3 = vector.load %arg3[%c0_3, %c0_4] : memref<1x512xf32, #tpu.memory_space<vmem>>, vector<1x512xf32>
    %4 = vector.broadcast %3 : vector<1x512xf32> to vector<16x512xf32>
    %5 = arith.addf %2, %4 : vector<16x512xf32>
    %6 = arith.truncf %5 : vector<16x512xf32> to vector<16x512xbf16>
    %c0_5 = arith.constant 0 : index
    %c0_6 = arith.constant 0 : index
    %7 = vector.load %arg4[%c0_5, %c0_6] : memref<16x512xbf16, #tpu.memory_space<vmem>>, vector<16x512xbf16>
    tpu.vector_store %arg4[%c0_5, %c0_6], %6 {strides = array<i32>} : memref<16x512xbf16, #tpu.memory_space<vmem>>, vector<16x512xbf16>,
    return
  }
  func.func @transform_0(%arg0: i32) -> (i32, i32) {
    %c0_i32 = arith.constant 0 : i32
    %c0_i32_0 = arith.constant 0 : i32
    return %arg0, %c0_i32 : i32, i32
  }
  func.func @transform_1(%arg0: i32) -> (i32, i32) {
    %c0_i32 = arith.constant 0 : i32
    %c0_i32_0 = arith.constant 0 : i32
    %c0_i32_1 = arith.constant 0 : i32
    return %c0_i32, %c0_i32_0 : i32, i32
  }
  func.func @transform_2(%arg0: i32) -> (i32, i32) {
    %c0_i32 = arith.constant 0 : i32
    %c0_i32_0 = arith.constant 0 : i32
    %c0_i32_1 = arith.constant 0 : i32
    return %c0_i32, %c0_i32_0 : i32, i32
  }
  func.func @transform_3(%arg0: i32) -> (i32, i32) {
    %c0_i32 = arith.constant 0 : i32
    %c0_i32_0 = arith.constant 0 : i32
    return %arg0, %c0_i32 : i32, i32
  }
}

</mosaic_0001>

<bundles_post_ra>
// kernel: tpu_custom_call.1
= control target key start
LH: loop header
LB: loop body
LE: loop exit
PB: predicated region body
PF: predicated region fallthrough
CT: control target
= control target key end

     0   :  { %8 = vsyncpa [#allocation3], 0  ;;  %s442_s0 = inlined_call_operand.hbm [shape: bf16[16,32], index: 0, kind: input, shape index: {}]   ;;  %s443_s1 = inlined_call_operand.hbm [shape: bf16[32,512], index: 1, kind: input, shape index: {}]   ;;  %s444_s2 = inlined_call_operand.vmem [shape: f32[1,512], index: 2, kind: input, shape index: {}]   ;;  %s445_s3 = inlined_call_operand.hbm [shape: bf16[16,512], index: 3, kind: output, shape index: {}]  }
   0x1   :  { %9 = vsyncpa [#allocation6], 0 }
   0x2   :  { %10 = vsyncpa [#allocation4], 0  ;;  %s369_s12 = smov [#allocation2]   ;;  %s297_s16 = scalar_lea.hbm %s442_s0, 128 }
   0x3   :  { %s16_s13 = sshll.u32 %s369_s12, 4  ;;  %p298_p0 = scmp.ne.s32.totalorder %s442_s0, %s297_s16  ;;  %s17_s13 = int_to_ptr.vmem [resolvable:$true] %s16_s13 }
   0x4   :  { %p301_p1 = scmp.lt.u32.totalorder %s297_s16, %s442_s0 }
   0x6   :  { %p303_p2 = pnand %p301_p1, %p298_p0 }
   0x8   :  { %306 = shalt.err (!%p303_p2)
}
   0x9   :  { %s307_s21 = scalar_lea.vmem %s17_s13, 128  ;;  %p312_p4 = scmp.lt.s32.totalorder %s17_s13, %s17_s13 }
   0xa   :  { %p308_p3 = scmp.ne.s32.totalorder %s17_s13, %s307_s21  ;;  %p313_p5 = scmp.lt.s32.totalorder %s307_s21, %s307_s21 }
   0xc   :  { %p314_p6 = por %p313_p5, %p312_p4 }
   0xe   :  { %p315_p7 = pnand %p314_p6, %p308_p3 }
  0x10   :  { %318 = shalt.err (!%p315_p7)
}
  0x11   :  { %s370_s22 = smov 64   ;;  %s371_s23 = smov 4  }
  0x12   :  { %22 = dma.hbm_to_vmem [thread:$0]  %s442_s0, 128, %s17_s13, [#allocation3], %s370_s22, %s370_s22, %s371_s23  }
  0x13   :  { %s372_s26 = smov [#allocation5]   ;;  %s319_s30 = scalar_lea.hbm %s443_s1, 1024 }
  0x14   :  { %s28_s27 = sshll.u32 %s372_s26, 4  ;;  %p320_p8 = scmp.ne.s32.totalorder %s443_s1, %s319_s30  ;;  %s29_s27 = int_to_ptr.vmem [resolvable:$true] %s28_s27 }
  0x15   :  { %p323_p9 = scmp.lt.u32.totalorder %s319_s30, %s443_s1 }
  0x17   :  { %p325_p10 = pnand %p323_p9, %p320_p8 }
  0x19   :  { %328 = shalt.err (!%p325_p10)
}
  0x1a   :  { %s329_s8 = scalar_lea.vmem %s29_s27, 1024  ;;  %p334_p12 = scmp.lt.s32.totalorder %s29_s27, %s29_s27 }
  0x1b   :  { %p330_p11 = scmp.ne.s32.totalorder %s29_s27, %s329_s8  ;;  %p335_p13 = scmp.lt.s32.totalorder %s329_s8, %s329_s8 }
  0x1d   :  { %p336_p0 = por %p335_p13, %p334_p12 }
  0x1f   :  { %p337_p1 = pnand %p336_p0, %p330_p11 }
  0x21   :  { %340 = shalt.err (!%p337_p1)
}
  0x22   :  { %s373_s0 = smov 256   ;;  %s374_s9 = smov 16  }
  0x23   :  { %34 = dma.hbm_to_vmem [thread:$0]  %s443_s1, 1024, %s29_s27, [#allocation6], %s373_s0, %s373_s0, %s374_s9  }
  0x24   :  { %363 = dma.done.wait [#allocation3], 128  }
  0x25   :  { %364 = vsyncadd [#allocation3], 4294967168 }
  0x26   :  { %365 = dma.done.wait [#allocation6], 1024  }
  0x27   :  { %366 = vsyncadd [#allocation6], 4294966272  ;;  %v375_v0 = vmov 0   ;;  %v284_v1 = vld [vmem:[#allocation5 + $0x4] ss:$16 sps:$4 sm:$0xff]   ;;  %v296_v9 = vld [vmem:[#allocation2] sm:$0xff]   ;;  %v56_v10 = vlaneseq }
  0x28   :  { %157 = vmatprep.mubr.bf16.mxu0 %v375_v0  ;;  %200 = vmatprep.mubr.bf16.mxu1 %v375_v0  ;;  %v286_v2 = vld [vmem:[#allocation5 + $0xc] ss:$16 sps:$4 sm:$0xff]   ;;  %v288_v3 = vld [vmem:[#allocation5] ss:$16 sps:$4 sm:$0xff]   ;;  %v289_v4 = vld [vmem:[#allocation5 + $0x8] ss:$16 sps:$4 sm:$0xff]  }
  0x29   :  { %125 = vmatprep.subr.bf16.mxu0 %v284_v1  ;;  %168 = vmatprep.subr.bf16.mxu1 %v286_v2  ;;  %v290_v5 = vld [vmem:[#allocation5 + $0x24] ss:$16 sps:$4 sm:$0xff]   ;;  %v292_v6 = vld [vmem:[#allocation5 + $0x2c] ss:$16 sps:$4 sm:$0xff]   ;;  %v294_v7 = vld [vmem:[#allocation5 + $0x20] ss:$16 sps:$4 sm:$0xff]  }
  0x2a   :  { %126 = vmatpush1.bf16.msra.mxu0 %v288_v3  ;;  %169 = vmatpush1.bf16.msra.mxu1 %v289_v4  ;;  %v295_v8 = vld [vmem:[#allocation5 + $0x28] ss:$16 sps:$4 sm:$0xff]   ;;  %vm121_vm0 = vcmask 261120   ;;  %v57_v11 = vshrl.u32 %v56_v10, 7 }
  0x2b   :  { %127 = vmatprep.subr.bf16.mxu0 %v290_v5  ;;  %170 = vmatprep.subr.bf16.mxu1 %v292_v6  ;;  %v54_v14 = vld [vmem:[%s444_s2] sm:$0xf]  ;;  %s376_s2 = smov [#allocation7]  }
  0x2c   :  { %v58_v12 = vsub.s32 0, %v57_v11  ;;  %v66_v13 = vsub.s32 2, %v57_v11  ;;  %v62_v15 = vsub.s32 1, %v57_v11  ;;  %v70_v16 = vsub.s32 3, %v57_v11  ;;  %s244_s13 = sshll.u32 %s376_s2, 4  ;;  %s245_s13 = int_to_ptr.vmem [resolvable:$true] %s244_s13 }
  0x2d   :  { %s341_s14 = scalar_lea.vmem %s245_s13, 512  ;;  %p346_p3 = scmp.lt.s32.totalorder %s245_s13, %s245_s13 }
  0x2e   :  { %128 = vmatpush1.bf16.msra.mxu0 %v294_v7  ;;  %171 = vmatpush1.bf16.msra.mxu1 %v295_v8  ;;  %v59_v17 = vrot.slane %v54_v14, %v58_v12  ;;  %v67_v18 = vrot.slane %v54_v14, %v66_v13  ;;  %v63_v19 = vrot.slane %v54_v14, %v62_v15  ;;  %p342_p2 = scmp.ne.s32.totalorder %s245_s13, %s341_s14  ;;  %p347_p4 = scmp.lt.s32.totalorder %s341_s14, %s341_s14 }
  0x2f   :  { %v71_v20 = vrot.slane %v54_v14, %v70_v16 }
  0x30   :  { %p348_p5 = por %p347_p4, %p346_p3 }
  0x31   :  { %266 = vmatmul.mubr.msk.bf16.vlgmr.msra.gmra.mrb[0].mxu0 %vm121_vm0, %v296_v9  ;;  %267 = vmatmul.mubr.msk.bf16.vlgmr.msra.gmra.mrb[0].mxu1 %vm121_vm0, %v296_v9 }
  0x32   :  { %p349_p6 = pnand %p348_p5, %p342_p2 }
 0x104   :  { %v159_v21 = vpop.f32.mrb[0].mxu0  ;;  %v202_v22 = vpop.f32.mrb[0].mxu1 }
 0x105   :  { %v160_v23 = vadd.f32 %v159_v21, %v59_v17  ;;  %v203_v24 = vadd.f32 %v202_v22, %v67_v18  ;;  %v161_v25 = vpop.f32.mrb[1].mxu0  ;;  %v204_v26 = vpop.f32.mrb[1].mxu1 }
 0x106   :  { %v162_v27 = vadd.f32 %v161_v25, %v63_v19  ;;  %v205_v28 = vadd.f32 %v204_v26, %v71_v20  ;;  %v163_v29 = vpop.f32.mrb[2].mxu0  ;;  %v206_v30 = vpop.f32.mrb[2].mxu1 }
 0x107   :  { %v164_v31 = vadd.f32 %v163_v29, %v59_v17  ;;  %v207_v32 = vadd.f32 %v206_v30, %v67_v18  ;;  %v165_v33 = vpop.f32.mrb[3].mxu0  ;;  %v208_v34 = vpop.f32.mrb[3].mxu1 }
 0x108   :  { %v272_v35 = vpack.c.bf16 %v162_v27, %v160_v23  ;;  %v273_v36 = vpack.c.bf16 %v205_v28, %v203_v24  ;;  %v166_v37 = vadd.f32 %v165_v33, %v63_v19  ;;  %v209_v38 = vadd.f32 %v208_v34, %v71_v20 }
 0x10a   :  { %235 = vst [vmem:[#allocation7] sm:$0xff] %v272_v35  ;;  %236 = vst [vmem:[#allocation7 + $0x8] sm:$0xff] %v273_v36  ;;  %v274_v39 = vpack.c.bf16 %v166_v37, %v164_v31  ;;  %v275_v40 = vpack.c.bf16 %v209_v38, %v207_v32 }
 0x10c   :  { %237 = vst [vmem:[#allocation7 + $0x10] sm:$0xff] %v274_v39  ;;  %238 = vst [vmem:[#allocation7 + $0x18] sm:$0xff] %v275_v40 }
 0x10d   :  { %352 = shalt.err (!%p349_p6)
}
 0x10e   :  { %s353_s17 = scalar_lea.hbm %s445_s3, 512 }
 0x10f   :  { %p354_p7 = scmp.ne.s32.totalorder %s445_s3, %s353_s17  ;;  %p357_p8 = scmp.lt.u32.totalorder %s353_s17, %s445_s3 }
 0x111   :  { %p359_p9 = pnand %p357_p8, %p354_p7 }
 0x113   :  { %362 = shalt.err (!%p359_p9)
}
 0x114   :  { %250 = dma.vmem_to_hbm [thread:$0]  %s245_s13, 512, %s445_s3, [#allocation4], %s373_s0, %s373_s0, %s374_s9  }
 0x115   :  { %367 = dma.done.wait [#allocation4], 512  }
 0x116   :  { %368 = vsyncadd [#allocation4], 4294966784 }
 0x117   :  { %254 = vsyncpa [#allocation3], 1 }
 0x118   :  { %255 = vsyncpa [#allocation6], 1 }
 0x119   :  { %256 = vsyncpa [#allocation4], 1 }

</bundles_post_ra>
